<compile_context>
chip_gen: v6e
topology: v6e:2x2x1
jax: 0.10.0
libtpu: 0.0.40
codegen_flags: <defaults>
</compile_context>

<pallas_src>
import jax
import jax.numpy as jnp
from jax import lax
from jax.experimental import pallas as pl
from jax.experimental.pallas import tpu as pltpu

INPUT_SIZE = 1
HIDDEN = 32


def rnn_kernel(x_ref, h0_ref, wih_ref, whh_ref, b_ref, wout_ref, bout_ref,
               out_ref, hT_ref):
    """tanh-RNN recurrence with fused input projection and per-step head.

    x_ref    : (B, T)     VMEM   inputs, feature dim (==1) squeezed, time on lanes
    h0_ref   : (1, B, H)  VMEM   initial hidden state
    wih_ref  : (1, H)     VMEM   input->hidden weights (input_size == 1)
    whh_ref  : (H, H)     VMEM   hidden->hidden weights, pre-transposed
    b_ref    : (1, H)     VMEM   combined bias (b_ih + b_hh)
    wout_ref : (1, H)     VMEM   output head weights
    bout_ref : (1,)       SMEM   output head bias (scalar)
    out_ref  : (B, T)     VMEM   per-step head outputs
    hT_ref   : (1, B, H)  VMEM   final hidden state (PyTorch layout)
    """
    T = x_ref.shape[1]

    wih = wih_ref[...]      # (1, H)
    whh = whh_ref[...]      # (H, H): h @ whh == h @ W_hh^T
    b = b_ref[...]          # (1, H)
    wout = wout_ref[...]    # (1, H)
    bout = bout_ref[0]      # scalar from SMEM

    # Hidden state carried in registers; no VMEM round trip per step.
    h = h0_ref[0]           # (B, H)

    # T is small & static -> fully unrolled at trace time (all slice offsets
    # are compile-time constants).  For long sequences: lax.fori_loop with a
    # capped unroll (e.g. 8) and a time-tiled "arbitrary" grid axis instead.
    for t in range(T):
        x_t = x_ref[:, pl.ds(t, 1)]                              # (B, 1)
        pre_t = x_t * wih + b                                    # fused input proj (VPU)
        h = jnp.tanh(pre_t + jnp.dot(h, whh,
                                     preferred_element_type=jnp.float32))
        # Output head for this step: lane reduce over H (XLU) + scalar bias.
        y_t = jnp.sum(h * wout, axis=-1, keepdims=True) + bout   # (B, 1)
        out_ref[:, pl.ds(t, 1)] = y_t

    hT_ref[0] = h.astype(hT_ref.dtype)


def rnn_forward(x, h_state, params):
    """x: (B, T, 1) float32, h_state: (1, B, H) or None. Returns (out, hT)."""
    B, T, _ = x.shape
    w_ih, w_hh, b_ih, b_hh, w_out, b_out = params
    if h_state is None:
        h_state = jnp.zeros((1, B, HIDDEN), jnp.float32)

    # Squeeze the size-1 feature dim so x does not pay last-dim-1 lane padding;
    # the kernel consumes the batch_first layout directly (no time transpose).
    x2d = jnp.squeeze(x, -1).astype(jnp.float32)         # (B, T)
    wih = w_ih.reshape(1, HIDDEN)                        # (H, 1) -> (1, H)
    whh_t = w_hh.T                                       # right-multiply form
    b = (b_ih + b_hh).reshape(1, HIDDEN)                 # combined bias
    wout = w_out.reshape(1, HIDDEN)                      # (1, H)
    bout = b_out.reshape(1).astype(jnp.float32)          # (1,) SMEM scalar

    vmem = pl.BlockSpec(memory_space=pltpu.MemorySpace.VMEM)
    smem = pl.BlockSpec(memory_space=pltpu.MemorySpace.SMEM)

    out_bt, h_n = pl.pallas_call(
        rnn_kernel,
        out_shape=(jax.ShapeDtypeStruct((B, T), jnp.float32),
                   jax.ShapeDtypeStruct((1, B, HIDDEN), jnp.float32)),
        in_specs=[vmem, vmem, vmem, vmem, vmem, vmem, smem],
        out_specs=(vmem, vmem),
    )(x2d, h_state, wih, whh_t, b, wout, bout)

    return out_bt[..., None], h_n                        # (B, T, 1), (1, B, H)


def rnn_forward_ref(x, h_state, params):
    """Pure-JAX reference mirroring torch nn.RNN + per-step Linear."""
    w_ih, w_hh, b_ih, b_hh, w_out, b_out = params
    B = x.shape[0]
    if h_state is None:
        h_state = jnp.zeros((1, B, HIDDEN), jnp.float32)
    h = h_state[0]

    def step(h, x_t):
        h_new = jnp.tanh(x_t @ w_ih.T + b_ih + h @ w_hh.T + b_hh)
        y = h_new @ w_out.T + b_out
        return h_new, y

    hT, ys = lax.scan(step, h, jnp.transpose(x, (1, 0, 2)))
    return jnp.transpose(ys, (1, 0, 2)), hT[None]


def init_params(key):
    """Deterministic init matching PyTorch param shapes (uniform +-1/sqrt(H))."""
    k = 1.0 / jnp.sqrt(jnp.float32(HIDDEN))
    ks = jax.random.split(key, 6)
    w_ih = jax.random.uniform(ks[0], (HIDDEN, INPUT_SIZE), jnp.float32, -k, k)
    w_hh = jax.random.uniform(ks[1], (HIDDEN, HIDDEN), jnp.float32, -k, k)
    b_ih = jax.random.uniform(ks[2], (HIDDEN,), jnp.float32, -k, k)
    b_hh = jax.random.uniform(ks[3], (HIDDEN,), jnp.float32, -k, k)
    w_out = jax.random.uniform(ks[4], (1, HIDDEN), jnp.float32, -k, k)
    b_out = jax.random.uniform(ks[5], (1,), jnp.float32, -k, k)
    return (w_ih, w_hh, b_ih, b_hh, w_out, b_out)


if __name__ == "__main__":
    B, T = 2, 8
    key = jax.random.PRNGKey(0)
    k_x, k_h, k_p = jax.random.split(key, 3)

    x = jax.random.normal(k_x, (B, T, INPUT_SIZE), jnp.float32)
    h0 = jax.random.normal(k_h, (1, B, HIDDEN), jnp.float32)
    params = init_params(k_p)

    fwd = jax.jit(rnn_forward)
    out, hT = fwd(x, h0, params)
    out = jax.block_until_ready(out)
    hT = jax.block_until_ready(hT)

    out_ref, hT_ref = rnn_forward_ref(x, h0, params)
    assert out.shape == (B, T, 1) and hT.shape == (1, B, HIDDEN)
    assert jnp.allclose(out, out_ref, atol=1e-5, rtol=1e-5)
    assert jnp.allclose(hT, hT_ref, atol=1e-5, rtol=1e-5)

    print("KERNEL_OK")
</pallas_src>

<mosaic_0001>
module attributes {stable_mosaic.version = 11 : i64} {
  func.func @rnn_kernel(%arg0: memref<2x8xf32, #tpu.memory_space<vmem>>, %arg1: memref<1x2x32xf32, #tpu.memory_space<vmem>>, %arg2: memref<1x32xf32, #tpu.memory_space<vmem>>, %arg3: memref<32x32xf32, #tpu.memory_space<vmem>>, %arg4: memref<1x32xf32, #tpu.memory_space<vmem>>, %arg5: memref<1x32xf32, #tpu.memory_space<vmem>>, %arg6: memref<1xf32, #tpu.memory_space<smem>>, %arg7: memref<2x8xf32, #tpu.memory_space<vmem>>, %arg8: memref<1x2x32xf32, #tpu.memory_space<vmem>>) attributes {dimension_semantics = [], scalar_prefetch = 0 : i64, scratch_operands = 0 : i64, tpu.core_type = #tpu.core_type<tc>} {
    %c0 = arith.constant 0 : index
    %c0_0 = arith.constant 0 : index
    %0 = vector.load %arg2[%c0, %c0_0] : memref<1x32xf32, #tpu.memory_space<vmem>>, vector<1x32xf32>
    %c0_1 = arith.constant 0 : index
    %c0_2 = arith.constant 0 : index
    %1 = vector.load %arg3[%c0_1, %c0_2] : memref<32x32xf32, #tpu.memory_space<vmem>>, vector<32x32xf32>
    %c0_3 = arith.constant 0 : index
    %c0_4 = arith.constant 0 : index
    %2 = vector.load %arg4[%c0_3, %c0_4] : memref<1x32xf32, #tpu.memory_space<vmem>>, vector<1x32xf32>
    %c0_5 = arith.constant 0 : index
    %c0_6 = arith.constant 0 : index
    %3 = vector.load %arg5[%c0_5, %c0_6] : memref<1x32xf32, #tpu.memory_space<vmem>>, vector<1x32xf32>
    %c0_7 = arith.constant 0 : index
    %4 = memref.load %arg6[%c0_7] : memref<1xf32, #tpu.memory_space<smem>>
    %c0_8 = arith.constant 0 : index
    %c0_9 = arith.constant 0 : index
    %c0_10 = arith.constant 0 : index
    %5 = vector.load %arg1[%c0_8, %c0_9, %c0_10] : memref<1x2x32xf32, #tpu.memory_space<vmem>>, vector<1x2x32xf32>
    %6 = vector.shape_cast %5 : vector<1x2x32xf32> to vector<2x32xf32>
    %c0_11 = arith.constant 0 : index
    %c0_12 = arith.constant 0 : index
    %7 = vector.load %arg0[%c0_11, %c0_12] : memref<2x8xf32, #tpu.memory_space<vmem>>, vector<2x1xf32>
    %8 = vector.broadcast %7 : vector<2x1xf32> to vector<2x32xf32>
    %9 = vector.broadcast %0 : vector<1x32xf32> to vector<2x32xf32>
    %10 = arith.mulf %8, %9 : vector<2x32xf32>
    %11 = vector.broadcast %2 : vector<1x32xf32> to vector<2x32xf32>
    %12 = arith.addf %10, %11 : vector<2x32xf32>
    %cst = arith.constant dense<0.000000e+00> : vector<2x32xf32>
    %13 = tpu.matmul %6, %1, %cst {dimension_numbers = #tpu.dot_dimension_numbers<[1], [0], [0], [1], [0, 0, 1, 1], [], []>} : vector<2x32xf32>, vector<32x32xf32>, vector<2x32xf32> -> vector<2x32xf32>
    %14 = arith.addf %12, %13 : vector<2x32xf32>
    %15 = math.tanh %14 : vector<2x32xf32>
    %16 = vector.broadcast %3 : vector<1x32xf32> to vector<2x32xf32>
    %17 = arith.mulf %15, %16 : vector<2x32xf32>
    %cst_13 = arith.constant dense<0.000000e+00> : vector<2xf32>
    %18 = vector.multi_reduction <add>, %17, %cst_13 [1] : vector<2x32xf32> to vector<2xf32>
    %19 = vector.shape_cast %18 : vector<2xf32> to vector<2x1xf32>
    %20 = vector.broadcast %4 : f32 to vector<2x1xf32>
    %21 = arith.addf %19, %20 : vector<2x1xf32>
    %c0_14 = arith.constant 0 : index
    %c0_15 = arith.constant 0 : index
    %22 = vector.load %arg7[%c0_14, %c0_15] : memref<2x8xf32, #tpu.memory_space<vmem>>, vector<2x1xf32>
    tpu.vector_store %arg7[%c0_14, %c0_15], %21 {strides = array<i32>} : memref<2x8xf32, #tpu.memory_space<vmem>>, vector<2x1xf32>,
    %c0_16 = arith.constant 0 : index
    %c1 = arith.constant 1 : index
    %23 = vector.load %arg0[%c0_16, %c1] : memref<2x8xf32, #tpu.memory_space<vmem>>, vector<2x1xf32>
    %24 = vector.broadcast %23 : vector<2x1xf32> to vector<2x32xf32>
    %25 = vector.broadcast %0 : vector<1x32xf32> to vector<2x32xf32>
    %26 = arith.mulf %24, %25 : vector<2x32xf32>
    %27 = vector.broadcast %2 : vector<1x32xf32> to vector<2x32xf32>
    %28 = arith.addf %26, %27 : vector<2x32xf32>
    %cst_17 = arith.constant dense<0.000000e+00> : vector<2x32xf32>
    %29 = tpu.matmul %15, %1, %cst_17 {dimension_numbers = #tpu.dot_dimension_numbers<[1], [0], [0], [1], [0, 0, 1, 1], [], []>} : vector<2x32xf32>, vector<32x32xf32>, vector<2x32xf32> -> vector<2x32xf32>
    %30 = arith.addf %28, %29 : vector<2x32xf32>
    %31 = math.tanh %30 : vector<2x32xf32>
    %32 = vector.broadcast %3 : vector<1x32xf32> to vector<2x32xf32>
    %33 = arith.mulf %31, %32 : vector<2x32xf32>
    %cst_18 = arith.constant dense<0.000000e+00> : vector<2xf32>
    %34 = vector.multi_reduction <add>, %33, %cst_18 [1] : vector<2x32xf32> to vector<2xf32>
    %35 = vector.shape_cast %34 : vector<2xf32> to vector<2x1xf32>
    %36 = vector.broadcast %4 : f32 to vector<2x1xf32>
    %37 = arith.addf %35, %36 : vector<2x1xf32>
    %c0_19 = arith.constant 0 : index
    %c1_20 = arith.constant 1 : index
    %38 = vector.load %arg7[%c0_19, %c1_20] : memref<2x8xf32, #tpu.memory_space<vmem>>, vector<2x1xf32>
    tpu.vector_store %arg7[%c0_19, %c1_20], %37 {strides = array<i32>} : memref<2x8xf32, #tpu.memory_space<vmem>>, vector<2x1xf32>,
    %c0_21 = arith.constant 0 : index
    %c2 = arith.constant 2 : index
    %39 = vector.load %arg0[%c0_21, %c2] : memref<2x8xf32, #tpu.memory_space<vmem>>, vector<2x1xf32>
    %40 = vector.broadcast %39 : vector<2x1xf32> to vector<2x32xf32>
    %41 = vector.broadcast %0 : vector<1x32xf32> to vector<2x32xf32>
    %42 = arith.mulf %40, %41 : vector<2x32xf32>
    %43 = vector.broadcast %2 : vector<1x32xf32> to vector<2x32xf32>
    %44 = arith.addf %42, %43 : vector<2x32xf32>
    %cst_22 = arith.constant dense<0.000000e+00> : vector<2x32xf32>
    %45 = tpu.matmul %31, %1, %cst_22 {dimension_numbers = #tpu.dot_dimension_numbers<[1], [0], [0], [1], [0, 0, 1, 1], [], []>} : vector<2x32xf32>, vector<32x32xf32>, vector<2x32xf32> -> vector<2x32xf32>
    %46 = arith.addf %44, %45 : vector<2x32xf32>
    %47 = math.tanh %46 : vector<2x32xf32>
    %48 = vector.broadcast %3 : vector<1x32xf32> to vector<2x32xf32>
    %49 = arith.mulf %47, %48 : vector<2x32xf32>
    %cst_23 = arith.constant dense<0.000000e+00> : vector<2xf32>
    %50 = vector.multi_reduction <add>, %49, %cst_23 [1] : vector<2x32xf32> to vector<2xf32>
    %51 = vector.shape_cast %50 : vector<2xf32> to vector<2x1xf32>
    %52 = vector.broadcast %4 : f32 to vector<2x1xf32>
    %53 = arith.addf %51, %52 : vector<2x1xf32>
    %c0_24 = arith.constant 0 : index
    %c2_25 = arith.constant 2 : index
    %54 = vector.load %arg7[%c0_24, %c2_25] : memref<2x8xf32, #tpu.memory_space<vmem>>, vector<2x1xf32>
    tpu.vector_store %arg7[%c0_24, %c2_25], %53 {strides = array<i32>} : memref<2x8xf32, #tpu.memory_space<vmem>>, vector<2x1xf32>,
    %c0_26 = arith.constant 0 : index
    %c3 = arith.constant 3 : index
    %55 = vector.load %arg0[%c0_26, %c3] : memref<2x8xf32, #tpu.memory_space<vmem>>, vector<2x1xf32>
    %56 = vector.broadcast %55 : vector<2x1xf32> to vector<2x32xf32>
    %57 = vector.broadcast %0 : vector<1x32xf32> to vector<2x32xf32>
    %58 = arith.mulf %56, %57 : vector<2x32xf32>
    %59 = vector.broadcast %2 : vector<1x32xf32> to vector<2x32xf32>
    %60 = arith.addf %58, %59 : vector<2x32xf32>
    %cst_27 = arith.constant dense<0.000000e+00> : vector<2x32xf32>
    %61 = tpu.matmul %47, %1, %cst_27 {dimension_numbers = #tpu.dot_dimension_numbers<[1], [0], [0], [1], [0, 0, 1, 1], [], []>} : vector<2x32xf32>, vector<32x32xf32>, vector<2x32xf32> -> vector<2x32xf32>
    %62 = arith.addf %60, %61 : vector<2x32xf32>
    %63 = math.tanh %62 : vector<2x32xf32>
    %64 = vector.broadcast %3 : vector<1x32xf32> to vector<2x32xf32>
    %65 = arith.mulf %63, %64 : vector<2x32xf32>
    %cst_28 = arith.constant dense<0.000000e+00> : vector<2xf32>
    %66 = vector.multi_reduction <add>, %65, %cst_28 [1] : vector<2x32xf32> to vector<2xf32>
    %67 = vector.shape_cast %66 : vector<2xf32> to vector<2x1xf32>
    %68 = vector.broadcast %4 : f32 to vector<2x1xf32>
    %69 = arith.addf %67, %68 : vector<2x1xf32>
    %c0_29 = arith.constant 0 : index
    %c3_30 = arith.constant 3 : index
    %70 = vector.load %arg7[%c0_29, %c3_30] : memref<2x8xf32, #tpu.memory_space<vmem>>, vector<2x1xf32>
    tpu.vector_store %arg7[%c0_29, %c3_30], %69 {strides = array<i32>} : memref<2x8xf32, #tpu.memory_space<vmem>>, vector<2x1xf32>,
    %c0_31 = arith.constant 0 : index
    %c4 = arith.constant 4 : index
    %71 = vector.load %arg0[%c0_31, %c4] : memref<2x8xf32, #tpu.memory_space<vmem>>, vector<2x1xf32>
    %72 = vector.broadcast %71 : vector<2x1xf32> to vector<2x32xf32>
    %73 = vector.broadcast %0 : vector<1x32xf32> to vector<2x32xf32>
    %74 = arith.mulf %72, %73 : vector<2x32xf32>
    %75 = vector.broadcast %2 : vector<1x32xf32> to vector<2x32xf32>
    %76 = arith.addf %74, %75 : vector<2x32xf32>
    %cst_32 = arith.constant dense<0.000000e+00> : vector<2x32xf32>
    %77 = tpu.matmul %63, %1, %cst_32 {dimension_numbers = #tpu.dot_dimension_numbers<[1], [0], [0], [1], [0, 0, 1, 1], [], []>} : vector<2x32xf32>, vector<32x32xf32>, vector<2x32xf32> -> vector<2x32xf32>
    %78 = arith.addf %76, %77 : vector<2x32xf32>
    %79 = math.tanh %78 : vector<2x32xf32>
    %80 = vector.broadcast %3 : vector<1x32xf32> to vector<2x32xf32>
    %81 = arith.mulf %79, %80 : vector<2x32xf32>
    %cst_33 = arith.constant dense<0.000000e+00> : vector<2xf32>
    %82 = vector.multi_reduction <add>, %81, %cst_33 [1] : vector<2x32xf32> to vector<2xf32>
    %83 = vector.shape_cast %82 : vector<2xf32> to vector<2x1xf32>
    %84 = vector.broadcast %4 : f32 to vector<2x1xf32>
    %85 = arith.addf %83, %84 : vector<2x1xf32>
    %c0_34 = arith.constant 0 : index
    %c4_35 = arith.constant 4 : index
    %86 = vector.load %arg7[%c0_34, %c4_35] : memref<2x8xf32, #tpu.memory_space<vmem>>, vector<2x1xf32>
    tpu.vector_store %arg7[%c0_34, %c4_35], %85 {strides = array<i32>} : memref<2x8xf32, #tpu.memory_space<vmem>>, vector<2x1xf32>,
    %c0_36 = arith.constant 0 : index
    %c5 = arith.constant 5 : index
    %87 = vector.load %arg0[%c0_36, %c5] : memref<2x8xf32, #tpu.memory_space<vmem>>, vector<2x1xf32>
    %88 = vector.broadcast %87 : vector<2x1xf32> to vector<2x32xf32>
    %89 = vector.broadcast %0 : vector<1x32xf32> to vector<2x32xf32>
    %90 = arith.mulf %88, %89 : vector<2x32xf32>
    %91 = vector.broadcast %2 : vector<1x32xf32> to vector<2x32xf32>
    %92 = arith.addf %90, %91 : vector<2x32xf32>
    %cst_37 = arith.constant dense<0.000000e+00> : vector<2x32xf32>
    %93 = tpu.matmul %79, %1, %cst_37 {dimension_numbers = #tpu.dot_dimension_numbers<[1], [0], [0], [1], [0, 0, 1, 1], [], []>} : vector<2x32xf32>, vector<32x32xf32>, vector<2x32xf32> -> vector<2x32xf32>
    %94 = arith.addf %92, %93 : vector<2x32xf32>
    %95 = math.tanh %94 : vector<2x32xf32>
    %96 = vector.broadcast %3 : vector<1x32xf32> to vector<2x32xf32>
    %97 = arith.mulf %95, %96 : vector<2x32xf32>
    %cst_38 = arith.constant dense<0.000000e+00> : vector<2xf32>
    %98 = vector.multi_reduction <add>, %97, %cst_38 [1] : vector<2x32xf32> to vector<2xf32>
    %99 = vector.shape_cast %98 : vector<2xf32> to vector<2x1xf32>
    %100 = vector.broadcast %4 : f32 to vector<2x1xf32>
    %101 = arith.addf %99, %100 : vector<2x1xf32>
    %c0_39 = arith.constant 0 : index
    %c5_40 = arith.constant 5 : index
    %102 = vector.load %arg7[%c0_39, %c5_40] : memref<2x8xf32, #tpu.memory_space<vmem>>, vector<2x1xf32>
    tpu.vector_store %arg7[%c0_39, %c5_40], %101 {strides = array<i32>} : memref<2x8xf32, #tpu.memory_space<vmem>>, vector<2x1xf32>,
    %c0_41 = arith.constant 0 : index
    %c6 = arith.constant 6 : index
    %103 = vector.load %arg0[%c0_41, %c6] : memref<2x8xf32, #tpu.memory_space<vmem>>, vector<2x1xf32>
    %104 = vector.broadcast %103 : vector<2x1xf32> to vector<2x32xf32>
    %105 = vector.broadcast %0 : vector<1x32xf32> to vector<2x32xf32>
    %106 = arith.mulf %104, %105 : vector<2x32xf32>
    %107 = vector.broadcast %2 : vector<1x32xf32> to vector<2x32xf32>
    %108 = arith.addf %106, %107 : vector<2x32xf32>
    %cst_42 = arith.constant dense<0.000000e+00> : vector<2x32xf32>
    %109 = tpu.matmul %95, %1, %cst_42 {dimension_numbers = #tpu.dot_dimension_numbers<[1], [0], [0], [1], [0, 0, 1, 1], [], []>} : vector<2x32xf32>, vector<32x32xf32>, vector<2x32xf32> -> vector<2x32xf32>
    %110 = arith.addf %108, %109 : vector<2x32xf32>
    %111 = math.tanh %110 : vector<2x32xf32>
    %112 = vector.broadcast %3 : vector<1x32xf32> to vector<2x32xf32>
    %113 = arith.mulf %111, %112 : vector<2x32xf32>
    %cst_43 = arith.constant dense<0.000000e+00> : vector<2xf32>
    %114 = vector.multi_reduction <add>, %113, %cst_43 [1] : vector<2x32xf32> to vector<2xf32>
    %115 = vector.shape_cast %114 : vector<2xf32> to vector<2x1xf32>
    %116 = vector.broadcast %4 : f32 to vector<2x1xf32>
    %117 = arith.addf %115, %116 : vector<2x1xf32>
    %c0_44 = arith.constant 0 : index
    %c6_45 = arith.constant 6 : index
    %118 = vector.load %arg7[%c0_44, %c6_45] : memref<2x8xf32, #tpu.memory_space<vmem>>, vector<2x1xf32>
    tpu.vector_store %arg7[%c0_44, %c6_45], %117 {strides = array<i32>} : memref<2x8xf32, #tpu.memory_space<vmem>>, vector<2x1xf32>,
    %c0_46 = arith.constant 0 : index
    %c7 = arith.constant 7 : index
    %119 = vector.load %arg0[%c0_46, %c7] : memref<2x8xf32, #tpu.memory_space<vmem>>, vector<2x1xf32>
    %120 = vector.broadcast %119 : vector<2x1xf32> to vector<2x32xf32>
    %121 = vector.broadcast %0 : vector<1x32xf32> to vector<2x32xf32>
    %122 = arith.mulf %120, %121 : vector<2x32xf32>
    %123 = vector.broadcast %2 : vector<1x32xf32> to vector<2x32xf32>
    %124 = arith.addf %122, %123 : vector<2x32xf32>
    %cst_47 = arith.constant dense<0.000000e+00> : vector<2x32xf32>
    %125 = tpu.matmul %111, %1, %cst_47 {dimension_numbers = #tpu.dot_dimension_numbers<[1], [0], [0], [1], [0, 0, 1, 1], [], []>} : vector<2x32xf32>, vector<32x32xf32>, vector<2x32xf32> -> vector<2x32xf32>
    %126 = arith.addf %124, %125 : vector<2x32xf32>
    %127 = math.tanh %126 : vector<2x32xf32>
    %128 = vector.broadcast %3 : vector<1x32xf32> to vector<2x32xf32>
    %129 = arith.mulf %127, %128 : vector<2x32xf32>
    %cst_48 = arith.constant dense<0.000000e+00> : vector<2xf32>
    %130 = vector.multi_reduction <add>, %129, %cst_48 [1] : vector<2x32xf32> to vector<2xf32>
    %131 = vector.shape_cast %130 : vector<2xf32> to vector<2x1xf32>
    %132 = vector.broadcast %4 : f32 to vector<2x1xf32>
    %133 = arith.addf %131, %132 : vector<2x1xf32>
    %c0_49 = arith.constant 0 : index
    %c7_50 = arith.constant 7 : index
    %134 = vector.load %arg7[%c0_49, %c7_50] : memref<2x8xf32, #tpu.memory_space<vmem>>, vector<2x1xf32>
    tpu.vector_store %arg7[%c0_49, %c7_50], %133 {strides = array<i32>} : memref<2x8xf32, #tpu.memory_space<vmem>>, vector<2x1xf32>,
    %c0_51 = arith.constant 0 : index
    %c0_52 = arith.constant 0 : index
    %c0_53 = arith.constant 0 : index
    %135 = vector.load %arg8[%c0_51, %c0_52, %c0_53] : memref<1x2x32xf32, #tpu.memory_space<vmem>>, vector<1x2x32xf32>
    %136 = vector.shape_cast %135 : vector<1x2x32xf32> to vector<2x32xf32>
    %137 = vector.shape_cast %127 : vector<2x32xf32> to vector<1x2x32xf32>
    tpu.vector_store %arg8[%c0_51, %c0_52, %c0_53], %137 {strides = array<i32>} : memref<1x2x32xf32, #tpu.memory_space<vmem>>, vector<1x2x32xf32>,
    return
  }
}

</mosaic_0001>

<bundles_post_ra>
// kernel: rnn_forward.1
= control target key start
LH: loop header
LB: loop body
LE: loop exit
PB: predicated region body
PF: predicated region fallthrough
CT: control target
= control target key end

     0   :  { %15 = vsyncpa [#allocation4], 0  ;;  %v1030_v1 = vmov 0.0   ;;  %vm1031_vm0 = vmmov 0   ;;  %v1032_v4 = vmov 0   ;;  %v1033_v7 = vmov 2   ;;  %s1298_s0 = inlined_call_operand.vmem [shape: f32[2,8], index: 0, kind: input, shape index: {}]   ;;  %s1299_s1 = inlined_call_operand.vmem [shape: f32[1,2,32], index: 1, kind: input, shape index: {}]   ;;  %s1300_s2 = inlined_call_operand.vmem [shape: f32[1,32], index: 2, kind: input, shape index: {}]   ;;  %s1301_s3 = inlined_call_operand.vmem [shape: f32[32,32], index: 3, kind: input, shape index: {}]   ;;  %s1302_s4 = inlined_call_operand.vmem [shape: f32[1,32], index: 4, kind: input, shape index: {}]   ;;  %s1303_s5 = inlined_call_operand.vmem [shape: f32[1,32], index: 5, kind: input, shape index: {}]   ;;  %s1304_s6 = inlined_call_operand.<no memory space> [shape: f32[1], index: 6, kind: input, shape index: {}]   ;;  %s1305_s7 = inlined_call_operand.hbm [shape: f32[2,8], index: 7, kind: output, shape index: {0}]   ;;  %s1306_s8 = inlined_call_operand.hbm [shape: f32[1,2,32], index: 8, kind: output, shape index: {1}]  }
   0x1   :  { %v1090_v0 = vld [vmem:[%s1301_s3 + $0x18] sm:$0xff]  ;;  %861 = vmatprep.subr.mxu0 %v1030_v1  ;;  %v1096_v2 = vld [vmem:[%s1301_s3 + $0x10] sm:$0xff]  ;;  %869 = vmatprep.mubr.msk.f32.mxu0 %vm1031_vm0, %v1030_v1  ;;  %v40_v3 = vld [vmem:[%s1298_s0] sm:$0x3] }
   0x2   :  { %862 = vmatpush3.msra.mxu0 %v1090_v0  ;;  %961 = vset.pattern.permute.xlu0 %v1032_v4  ;;  %v241_v5 = vld [vmem:[%s1298_s0] sm:$0x3]  ;;  %v1111_v6 = vld [vmem:[%s1301_s3 + $0x8] sm:$0xff] }
   0x3   :  { %863 = vmatprep.subr.mxu0 %v1030_v1  ;;  %43 = vperm.xlu0 %961, %v40_v3  }
   0x4   :  { %864 = vmatpush3.msra.mxu0 %v1096_v2  ;;  %963 = vset.pattern.permute.xlu1 %v1033_v7 }
   0x5   :  { %16 = vsyncpa [#allocation6], 0  ;;  %865 = vmatprep.subr.mxu0 %v1030_v1  ;;  %v1118_v8 = vld [vmem:[%s1301_s3] sm:$0xff]  ;;  %244 = vperm.xlu1 %963, %v241_v5   ;;  %vm60_vm1 = vcmask 261120   ;;  %v1034_v11 = vmov 3   ;;  %v1035_v13 = vmov 4   ;;  %v1201_v36 = vstv %s1304_s6 }
   0x6   :  { %866 = vmatpush3.msra.mxu0 %v1111_v6  ;;  %v39_v9 = vld [vmem:[%s1299_s1] sm:$0x3]  ;;  %872 = vmatprep.subr.mxu1 %v1030_v1  ;;  %v1036_v15 = vmov 6   ;;  %v1037_v17 = vmov 1   ;;  %vm143_vm2 = vcmask 254976   ;;  %v1038_v31 = vmov 5  }
   0x7   :  { %867 = vmatprep.subr.mxu0 %v1030_v1  ;;  %v331_v10 = vld [vmem:[%s1298_s0] sm:$0x3]  ;;  %873 = vmatpush3.msra.mxu1 %v1090_v0  ;;  %vm149_vm3 = vcmask 1024   ;;  %vm239_vm4 = vcmask 9224   ;;  %vm329_vm5 = vcmask 17424   ;;  %vm419_vm6 = vcmask 25624  }
   0x8   :  { %868 = vmatpush3.msra.mxu0 %v1118_v8  ;;  %874 = vmatprep.subr.mxu1 %v1030_v1  ;;  %v421_v12 = vld [vmem:[%s1298_s0] sm:$0x3]  ;;  %vm509_vm7 = vcmask 33824   ;;  %vm599_vm8 = vcmask 42024   ;;  %vm689_vm9 = vcmask 50224  }
   0x9   :  { %870 = vmatmul.mubr.msk.f32.vlgmr.msra.gmra.mxu0 %vm60_vm1, %v39_v9  ;;  %964 = vset.pattern.permute.xlu1 %v1034_v11  ;;  %v601_v14 = vld [vmem:[%s1298_s0] sm:$0x3] }
   0xa   :  { %334 = vperm.xlu1 %964, %v331_v10   ;;  %875 = vmatpush3.msra.mxu1 %v1096_v2  ;;  %v151_v16 = vld [vmem:[%s1298_s0] sm:$0x3] }
   0xb   :  { %876 = vmatprep.subr.mxu1 %v1030_v1  ;;  %880 = vmatprep.mubr.msk.f32.mxu1 %vm1031_vm0, %v1030_v1  ;;  %v1164_v19 = vld [vmem:[%s1300_s2] ss:$0 sm:$0xff] }
   0xc   :  { %877 = vmatpush3.msra.mxu1 %v1111_v6  ;;  %883 = vmatprep.subr.mxu0 %v1030_v1  ;;  %v1170_v21 = vld [vmem:[%s1302_s4] ss:$0 sm:$0xff] }
   0xd   :  { %878 = vmatprep.subr.mxu1 %v1030_v1  ;;  %884 = vmatpush3.msra.mxu0 %v1090_v0  ;;  %v1176_v26 = vld [vmem:[%s1303_s5] ss:$0 sm:$0xff] }
   0xe   :  { %965 = vset.pattern.permute.xlu1 %v1035_v13  ;;  %879 = vmatpush3.msra.mxu1 %v1118_v8  ;;  %v511_v30 = vld [vmem:[%s1298_s0] sm:$0x3] }
   0xf   :  { %424 = vperm.xlu1 %965, %v421_v12   ;;  %885 = vmatprep.subr.mxu0 %v1030_v1 }
  0x10   :  { %886 = vmatpush3.msra.mxu0 %v1096_v2  ;;  %891 = vmatprep.mubr.msk.f32.mxu0 %vm1031_vm0, %v1030_v1 }
  0x11   :  { %887 = vmatprep.subr.mxu0 %v1030_v1  ;;  %894 = vmatprep.subr.mxu1 %v1030_v1 }
  0x12   :  { %888 = vmatpush3.msra.mxu0 %v1111_v6  ;;  %962 = vset.pattern.permute.xlu0 %v1037_v17 }
  0x13   :  { %967 = vset.pattern.permute.xlu1 %v1036_v15  ;;  %889 = vmatprep.subr.mxu0 %v1030_v1 }
  0x14   :  { %604 = vperm.xlu1 %967, %v601_v14   ;;  %890 = vmatpush3.msra.mxu0 %v1118_v8 }
  0x15   :  { %905 = vmatprep.subr.mxu0 %v1030_v1  ;;  %154 = vperm.xlu0 %962, %v151_v16  }
  0x19   :  { %966 = vset.pattern.permute.xlu0 %v1038_v31 }
  0x1a   :  { %514 = vperm.xlu0 %966, %v511_v30  }
  0x7e   :  { %v44_v18 = vpop.permute.xlu0 %43 }
  0x7f   :  { %v52_v20 = vmul.f32 %v1164_v19, %v44_v18 }
  0x80   :  { %v245_v32 = vpop.permute.xlu1 %244 }
  0x81   :  { %v59_v22 = vadd.f32 %v1170_v21, %v52_v20  ;;  %v247_v51 = vmul.f32 %v1164_v19, %v245_v32 }
  0x83   :  { %v248_v52 = vadd.f32 %v1170_v21, %v247_v51 }
  0x85   :  { %v335_v33 = vpop.permute.xlu1 %334 }
  0x86   :  { %v337_v61 = vmul.f32 %v1164_v19, %v335_v33 }
  0x88   :  { %v338_v62 = vadd.f32 %v1170_v21, %v337_v61 }
  0x8a   :  { %v1194_v34 = vpop.permute.xlu1 %424 }
  0x8b   :  { %v427_v12 = vmul.f32 %v1164_v19, %v1194_v34 }
  0x8d   :  { %v428_v13 = vadd.f32 %v1170_v21, %v427_v12 }
  0x8f   :  { %v1196_v35 = vpop.permute.xlu1 %604 }
  0x90   :  { %v155_v39 = vpop.permute.xlu0 %154  ;;  %v607_v32 = vmul.f32 %v1164_v19, %v1196_v35 }
  0x91   :  { %v157_v40 = vmul.f32 %v1164_v19, %v155_v39 }
  0x92   :  { %v608_v33 = vadd.f32 %v1170_v21, %v607_v32 }
  0x93   :  { %v158_v41 = vadd.f32 %v1170_v21, %v157_v40 }
  0x95   :  { %v1219_v48 = vpop.permute.xlu0 %514 }
  0xc9   :  { %v130_v23 = vpop.f32.mrf.mxu0 }
  0xca   :  { %v134_v24 = vadd.f32 %v130_v23, %v59_v22  ;;  %v517_v23 = vmul.f32 %v1164_v19, %v1219_v48 }
  0xcb   :  { %v871_v25 = vpop.f32.mrf.mxu0 }
  0xcc   :  { %970 = vtanh.f32 %v134_v24  ;;  %v518_v24 = vadd.f32 %v1170_v21, %v517_v23 }
  0xd9   :  { %v971_v27 = vpop.eup %970 }
  0xda   :  { %881 = vmatmul.mubr.msk.f32.vlgmr.msra.gmra.mxu1 %vm60_vm1, %v971_v27  ;;  %v142_v28 = vmul.f32 %v971_v27, %v1176_v26 }
  0xdb   :  { %895 = vmatpush3.msra.mxu1 %v1090_v0  ;;  %902 = vmatprep.mubr.msk.f32.mxu1 %vm1031_vm0, %v1030_v1 }
  0xdc   :  { %v144_v29 = vsel %vm143_vm2, %v142_v28, 0.0  ;;  %896 = vmatprep.subr.mxu1 %v1030_v1 }
  0xdd   :  { %145 = vadd.xlane.f32.xlu1 %v144_v29  ;;  %897 = vmatpush3.msra.mxu1 %v1096_v2  ;;  %v1039_v29 = vmov 7  }
  0xde   :  { %898 = vmatprep.subr.mxu1 %v1030_v1  ;;  %968 = vset.pattern.permute.xlu1 %v1039_v29 }
  0xdf   :  { %899 = vmatpush3.msra.mxu1 %v1111_v6  ;;  %969 = vset.pattern.permute.xlu0 %v1039_v29 }
  0xe0   :  { %900 = vmatprep.subr.mxu1 %v1030_v1 }
  0xe1   :  { %901 = vmatpush3.msra.mxu1 %v1118_v8 }
  0xe2   :  { %916 = vmatprep.subr.mxu1 %v1030_v1 }
 0x166   :  { %v146_v37 = vpop.xlane.xlu1 %145 }
 0x167   :  { %v148_v38 = vadd.f32 %v1201_v36, %v146_v37 }
 0x169   :  { %150 = vst.msk [vmem:[#allocation3] sm:$0x3] %vm149_vm3, %v148_v38 }
 0x19a   :  { %v228_v42 = vpop.f32.mrf.mxu1 }
 0x19b   :  { %v232_v43 = vadd.f32 %v228_v42, %v158_v41 }
 0x19c   :  { %v882_v44 = vpop.f32.mrf.mxu1 }
 0x19d   :  { %972 = vtanh.f32 %v232_v43 }
 0x1aa   :  { %v973_v45 = vpop.eup %972 }
 0x1ab   :  { %892 = vmatmul.mubr.msk.f32.vlgmr.msra.gmra.mxu0 %vm60_vm1, %v973_v45  ;;  %v234_v46 = vmul.f32 %v973_v45, %v1176_v26 }
 0x1ac   :  { %906 = vmatpush3.msra.mxu0 %v1090_v0  ;;  %913 = vmatprep.mubr.msk.f32.mxu0 %vm1031_vm0, %v1030_v1 }
 0x1ad   :  { %v235_v47 = vsel %vm143_vm2, %v234_v46, 0.0  ;;  %907 = vmatprep.subr.mxu0 %v1030_v1 }
 0x1ae   :  { %236 = vadd.xlane.f32.xlu0 %v235_v47  ;;  %908 = vmatpush3.msra.mxu0 %v1096_v2 }
 0x1af   :  { %909 = vmatprep.subr.mxu0 %v1030_v1 }
 0x1b0   :  { %910 = vmatpush3.msra.mxu0 %v1111_v6 }
 0x1b1   :  { %911 = vmatprep.subr.mxu0 %v1030_v1 }
 0x1b2   :  { %912 = vmatpush3.msra.mxu0 %v1118_v8 }
 0x1b3   :  { %927 = vmatprep.subr.mxu0 %v1030_v1 }
 0x237   :  { %v237_v49 = vpop.xlane.xlu0 %236 }
 0x238   :  { %v238_v50 = vadd.f32 %v237_v49, %v1201_v36 }
 0x23a   :  { %240 = vst.msk [vmem:[#allocation3] sm:$0x3] %vm239_vm4, %v238_v50 }
 0x26b   :  { %v318_v53 = vpop.f32.mrf.mxu0 }
 0x26c   :  { %v322_v54 = vadd.f32 %v318_v53, %v248_v52 }
 0x26d   :  { %v893_v55 = vpop.f32.mrf.mxu0 }
 0x26e   :  { %974 = vtanh.f32 %v322_v54 }
 0x27b   :  { %v975_v56 = vpop.eup %974 }
 0x27c   :  { %903 = vmatmul.mubr.msk.f32.vlgmr.msra.gmra.mxu1 %vm60_vm1, %v975_v56  ;;  %v324_v57 = vmul.f32 %v975_v56, %v1176_v26 }
 0x27d   :  { %917 = vmatpush3.msra.mxu1 %v1090_v0  ;;  %924 = vmatprep.mubr.msk.f32.mxu1 %vm1031_vm0, %v1030_v1 }
 0x27e   :  { %v325_v58 = vsel %vm143_vm2, %v324_v57, 0.0  ;;  %918 = vmatprep.subr.mxu1 %v1030_v1 }
 0x27f   :  { %326 = vadd.xlane.f32.xlu0 %v325_v58  ;;  %919 = vmatpush3.msra.mxu1 %v1096_v2 }
 0x280   :  { %920 = vmatprep.subr.mxu1 %v1030_v1 }
 0x281   :  { %921 = vmatpush3.msra.mxu1 %v1111_v6 }
 0x282   :  { %922 = vmatprep.subr.mxu1 %v1030_v1 }
 0x283   :  { %923 = vmatpush3.msra.mxu1 %v1118_v8 }
 0x284   :  { %938 = vmatprep.subr.mxu1 %v1030_v1 }
 0x308   :  { %v327_v59 = vpop.xlane.xlu0 %326 }
 0x309   :  { %v328_v60 = vadd.f32 %v327_v59, %v1201_v36 }
 0x30b   :  { %330 = vst.msk [vmem:[#allocation3] sm:$0x3] %vm329_vm5, %v328_v60 }
 0x33c   :  { %v408_v63 = vpop.f32.mrf.mxu1 }
 0x33d   :  { %v412_v3 = vadd.f32 %v408_v63, %v338_v62 }
 0x33e   :  { %v904_v4 = vpop.f32.mrf.mxu1 }
 0x33f   :  { %976 = vtanh.f32 %v412_v3 }
 0x34c   :  { %v977_v5 = vpop.eup %976 }
 0x34d   :  { %914 = vmatmul.mubr.msk.f32.vlgmr.msra.gmra.mxu0 %vm60_vm1, %v977_v5  ;;  %v414_v7 = vmul.f32 %v977_v5, %v1176_v26 }
 0x34e   :  { %928 = vmatpush3.msra.mxu0 %v1090_v0  ;;  %935 = vmatprep.mubr.msk.f32.mxu0 %vm1031_vm0, %v1030_v1 }
 0x34f   :  { %v415_v9 = vsel %vm143_vm2, %v414_v7, 0.0  ;;  %929 = vmatprep.subr.mxu0 %v1030_v1 }
 0x350   :  { %416 = vadd.xlane.f32.xlu1 %v415_v9  ;;  %930 = vmatpush3.msra.mxu0 %v1096_v2 }
 0x351   :  { %931 = vmatprep.subr.mxu0 %v1030_v1 }
 0x352   :  { %932 = vmatpush3.msra.mxu0 %v1111_v6 }
 0x353   :  { %933 = vmatprep.subr.mxu0 %v1030_v1 }
 0x354   :  { %934 = vmatpush3.msra.mxu0 %v1118_v8 }
 0x3d9   :  { %v417_v10 = vpop.xlane.xlu1 %416 }
 0x3da   :  { %v418_v11 = vadd.f32 %v417_v10, %v1201_v36 }
 0x3dc   :  { %420 = vst.msk [vmem:[#allocation3] sm:$0x3] %vm419_vm6, %v418_v11 }
 0x40d   :  { %v498_v14 = vpop.f32.mrf.mxu0 }
 0x40e   :  { %v502_v15 = vadd.f32 %v498_v14, %v428_v13 }
 0x40f   :  { %v915_v16 = vpop.f32.mrf.mxu0 }
 0x410   :  { %978 = vtanh.f32 %v502_v15 }
 0x41d   :  { %v979_v17 = vpop.eup %978 }
 0x41e   :  { %925 = vmatmul.mubr.msk.f32.vlgmr.msra.gmra.mxu1 %vm60_vm1, %v979_v17  ;;  %v504_v18 = vmul.f32 %v979_v17, %v1176_v26 }
 0x41f   :  { %939 = vmatpush3.msra.mxu1 %v1090_v0  ;;  %946 = vmatprep.mubr.msk.f32.mxu1 %vm1031_vm0, %v1030_v1 }
 0x420   :  { %v505_v20 = vsel %vm143_vm2, %v504_v18, 0.0  ;;  %940 = vmatprep.subr.mxu1 %v1030_v1 }
 0x421   :  { %506 = vadd.xlane.f32.xlu0 %v505_v20  ;;  %941 = vmatpush3.msra.mxu1 %v1096_v2 }
 0x422   :  { %942 = vmatprep.subr.mxu1 %v1030_v1 }
 0x423   :  { %943 = vmatpush3.msra.mxu1 %v1111_v6 }
 0x424   :  { %944 = vmatprep.subr.mxu1 %v1030_v1 }
 0x425   :  { %945 = vmatpush3.msra.mxu1 %v1118_v8  ;;  %v691_v8 = vld [vmem:[%s1298_s0] sm:$0x3]  ;;  %s1040_s0 = smov [#allocation5]  }
 0x426   :  { %s798_s11 = sshll.u32 %s1040_s0, 4  ;;  %s799_s11 = int_to_ptr.vmem [resolvable:$true] %s798_s11 }
 0x427   :  { %s986_s12 = scalar_lea.vmem %s799_s11, 32  ;;  %p991_p1 = scmp.lt.s32.totalorder %s799_s11, %s799_s11 }
 0x428   :  { %p987_p0 = scmp.ne.s32.totalorder %s799_s11, %s986_s12  ;;  %p992_p2 = scmp.lt.s32.totalorder %s986_s12, %s986_s12 }
 0x42a   :  { %p993_p3 = por %p992_p2, %p991_p1 }
 0x42c   :  { %p994_p4 = pnand %p993_p3, %p987_p0 }
 0x4aa   :  { %v507_v0 = vpop.xlane.xlu0 %506 }
 0x4ab   :  { %v508_v22 = vadd.f32 %v507_v0, %v1201_v36 }
 0x4ad   :  { %510 = vst.msk [vmem:[#allocation3] sm:$0x3] %vm509_vm7, %v508_v22 }
 0x4de   :  { %v588_v25 = vpop.f32.mrf.mxu1 }
 0x4df   :  { %v592_v2 = vadd.f32 %v588_v25, %v518_v24 }
 0x4e0   :  { %v926_v27 = vpop.f32.mrf.mxu1 }
 0x4e1   :  { %980 = vtanh.f32 %v592_v2 }
 0x4ee   :  { %v981_v28 = vpop.eup %980 }
 0x4ef   :  { %936 = vmatmul.mubr.msk.f32.vlgmr.msra.gmra.mxu0 %vm60_vm1, %v981_v28  ;;  %v594_v1 = vmul.f32 %v981_v28, %v1176_v26 }
 0x4f1   :  { %v595_v6 = vsel %vm143_vm2, %v594_v1, 0.0 }
 0x4f2   :  { %596 = vadd.xlane.f32.xlu1 %v595_v6 }
 0x503   :  { %694 = vperm.xlu1 %968, %v691_v8  }
 0x57b   :  { %v597_v30 = vpop.xlane.xlu1 %596 }
 0x57c   :  { %v598_v31 = vadd.f32 %v597_v30, %v1201_v36 }
 0x57e   :  { %600 = vst.msk [vmem:[#allocation3] sm:$0x3] %vm599_vm8, %v598_v31 }
 0x57f   :  { %v695_v35 = vpop.permute.xlu1 %694 }
 0x580   :  { %v697_v44 = vmul.f32 %v1164_v19, %v695_v35 }
 0x582   :  { %v698_v45 = vadd.f32 %v1170_v21, %v697_v44 }
 0x5af   :  { %v678_v34 = vpop.f32.mrf.mxu0 }
 0x5b0   :  { %v682_v37 = vadd.f32 %v678_v34, %v608_v33 }
 0x5b1   :  { %v937_v38 = vpop.f32.mrf.mxu0 }
 0x5b2   :  { %982 = vtanh.f32 %v682_v37 }
 0x5bf   :  { %v983_v39 = vpop.eup %982 }
 0x5c0   :  { %947 = vmatmul.mubr.msk.f32.vlgmr.msra.gmra.mxu1 %vm60_vm1, %v983_v39  ;;  %v684_v40 = vmul.f32 %v983_v39, %v1176_v26 }
 0x5c2   :  { %v685_v41 = vsel %vm143_vm2, %v684_v40, 0.0 }
 0x5c3   :  { %686 = vadd.xlane.f32.xlu0 %v685_v41 }
 0x64c   :  { %v687_v42 = vpop.xlane.xlu0 %686 }
 0x64d   :  { %v688_v43 = vadd.f32 %v687_v42, %v1201_v36 }
 0x64f   :  { %690 = vst.msk [vmem:[#allocation3] sm:$0x3] %vm689_vm9, %v688_v43 }
 0x680   :  { %v768_v46 = vpop.f32.mrf.mxu1 }
 0x681   :  { %v772_v47 = vadd.f32 %v768_v46, %v698_v45 }
 0x682   :  { %v948_v48 = vpop.f32.mrf.mxu1 }
 0x683   :  { %984 = vtanh.f32 %v772_v47 }
 0x690   :  { %v985_v49 = vpop.eup %984 }
 0x691   :  { %781 = vst.msk [vmem:[#allocation5] sm:$0x3] %vm143_vm2, %v985_v49  ;;  %v774_v50 = vmul.f32 %v985_v49, %v1176_v26 }
 0x693   :  { %v775_v51 = vsel %vm143_vm2, %v774_v50, 0.0 }
 0x694   :  { %776 = vadd.xlane.f32.xlu0 %v775_v51 }
 0x695   :  { %997 = shalt.err (!%p994_p4)
}
 0x696   :  { %801 = dma.vmem_to_hbm [thread:$0]  %s799_s11, 32, %s1306_s8, [#allocation6]   ;;  %vm779_vm10 = vcmask 58424  }
 0x697   :  { %s1041_s15 = smov [#allocation3]  }
 0x698   :  { %s788_s16 = sshll.u32 %s1041_s15, 4  ;;  %s789_s16 = int_to_ptr.vmem [resolvable:$true] %s788_s16 }
 0x699   :  { %s1006_s17 = scalar_lea.vmem %s789_s16, 32  ;;  %p1011_p6 = scmp.lt.s32.totalorder %s789_s16, %s789_s16 }
 0x69a   :  { %p1007_p5 = scmp.ne.s32.totalorder %s789_s16, %s1006_s17  ;;  %p1012_p7 = scmp.lt.s32.totalorder %s1006_s17, %s1006_s17 }
 0x69c   :  { %p1013_p8 = por %p1012_p7, %p1011_p6 }
 0x69e   :  { %p1014_p9 = pnand %p1013_p8, %p1007_p5 }
 0x71d   :  { %v777_v19 = vpop.xlane.xlu0 %776 }
 0x71e   :  { %v778_v21 = vadd.f32 %v777_v19, %v1201_v36 }
 0x720   :  { %780 = vst.msk [vmem:[#allocation3] sm:$0x3] %vm779_vm10, %v778_v21 }
 0x721   :  { %1017 = shalt.err (!%p1014_p9)
}
 0x722   :  { %791 = dma.vmem_to_hbm [thread:$0]  %s789_s16, 32, %s1305_s7, [#allocation4]  }
 0x723   :  { %1026 = dma.done.wait [#allocation4], 32  }
 0x724   :  { %1027 = vsyncadd [#allocation4], 4294967264 }
 0x725   :  { %1028 = dma.done.wait [#allocation6], 32  }
 0x726   :  { %1029 = vsyncadd [#allocation6], 4294967264 }
 0x727   :  { %808 = vsyncpa [#allocation4], 1 }
 0x728   :  { %809 = vsyncpa [#allocation6], 1 }

</bundles_post_ra>
